<compile_context>
chip_gen: v5e
topology: v5e:2x2
jax: 0.10.0
libtpu: 0.0.40
codegen_flags: <defaults>
</compile_context>

<pallas_src>
import functools

import jax
import jax.numpy as jnp
import numpy as np
from jax.experimental import pallas as pl
from jax.experimental.pallas import tpu as pltpu


# ----------------------------- Pallas kernel --------------------------------

def _mp_fused_kernel(mask_ref, nodes_ref, wt_ref, b_ref, out_ref, *,
                     apply_relu: bool, tb: int, n: int, d: int):
    """Fused:  relu?( (mask @ nodes) @ W + b + nodes )  for TB graphs."""
    # Mask arrives bf16 (exact for 0/1 adjacency); upcast once on the VPU.
    m = mask_ref[...].astype(jnp.float32)               # (TB, N, N)
    x = nodes_ref[...].astype(jnp.float32)              # (TB, N, D)

    # Per-graph aggregation: messages[b] = mask[b] @ nodes[b]  (batched matmul)
    msg = jax.lax.dot_general(
        m, x,
        dimension_numbers=(((2,), (1,)), ((0,), (0,))),
        preferred_element_type=jnp.float32)              # (TB, N, D)

    # Leading-dim merge only (N is a multiple of the f32 sublane tile, so this
    # is a free re-view; the lane dim D is untouched).  One big MXU push of
    # TB*N rows for the Linear instead of TB pushes of N rows.
    msg2 = msg.reshape(tb * n, d)
    x2 = x.reshape(tb * n, d)

    lin = jnp.dot(msg2, wt_ref[...], preferred_element_type=jnp.float32)
    out = lin + b_ref[...] + x2                          # bias + residual
    if apply_relu:
        out = jnp.maximum(out, 0.0)
    out_ref[...] = out.astype(out_ref.dtype)


# ------------------------------- sizing --------------------------------------

def _vmem_capacity_bytes():
    """Physical VMEM per TensorCore; conservative (v7x) fallback."""
    try:
        info = pltpu.get_tpu_info()
        cap = getattr(info, "vmem_capacity_bytes", None)
        if cap:
            return int(cap)
    except Exception:
        pass
    return 64 << 20


def _vmem_limit_bytes(vmem_cap):
    """Scoped-VMEM limit passed to the compiler (leave headroom on v7x)."""
    return int(min(vmem_cap * 3 // 4, 100 << 20))


def _choose_tb(B, N_pad, D, nodes_itemsize, mask_itemsize, vmem_cap):
    """Batch elements per grid step, bounded by a generation-aware VMEM budget.

    Counts the double-buffered mask/nodes/out blocks AND the f32 in-kernel
    intermediates (mask upcast, msg, x2, lin/out).  Budget ~vmem/3, clamped to
    [8 MiB, 40 MiB] => ~21 MiB on v7x (64 MiB), 40 MiB on v5e/v6e (128 MiB).
    """
    budget = min(max(vmem_cap // 3, 8 << 20), 40 << 20)
    nbuf = 2  # default double buffering
    blocks = nbuf * (N_pad * N_pad * mask_itemsize          # mask block
                     + N_pad * D * nodes_itemsize           # nodes block
                     + N_pad * D * nodes_itemsize)          # out block
    interm = N_pad * N_pad * 4 + 4 * N_pad * D * 4          # f32 live values
    per_b = blocks + interm
    fixed = 2 * (D * D + D) * 4                              # resident W, bias
    tb = max(1, (budget - fixed) // per_b)
    tb = min(tb, B)
    if B >= 2:
        # Guarantee >= 2 grid blocks so v7x's 2 TensorCores both get work
        # ("parallel" batch axis); at most one extra grid step on 1-TC chips.
        tb = min(tb, -(-B // 2))
    return int(tb)


# ------------------------------- wrapper --------------------------------------

def _mp_layer_fused(nodes, mask, w_t, bias, *, apply_relu, buffering=None):
    """Shared driver.  w_t is already (in, out) == W.T;  bias is (D,)."""
    B, N, D = nodes.shape
    dtype = nodes.dtype
    itemsize = jnp.dtype(dtype).itemsize
    sub = {1: 32, 2: 16, 4: 8}.get(itemsize, 8)
    N_pad = ((N + sub - 1) // sub) * sub

    # 0/1 adjacency is exact in bf16 -> halves mask HBM traffic (mask dominates
    # input bytes whenever N >= D).  Upcast back to f32 inside the kernel.
    mask3 = jnp.reshape(mask, (B, N, N)).astype(jnp.bfloat16)
    nodes_p = nodes
    if N_pad != N:
        nodes_p = jnp.pad(nodes, ((0, 0), (0, N_pad - N), (0, 0)))
        mask3 = jnp.pad(mask3, ((0, 0), (0, N_pad - N), (0, N_pad - N)))

    w_t32 = w_t.astype(jnp.float32)                      # VMEM-resident, tiny
    bias2 = jnp.reshape(bias, (1, D)).astype(jnp.float32)

    vmem_cap = _vmem_capacity_bytes()
    tb = _choose_tb(B, N_pad, D, itemsize, 2, vmem_cap)
    grid = (pl.cdiv(B, tb),)                             # partial last block OK

    kernel = functools.partial(_mp_fused_kernel, apply_relu=apply_relu,
                               tb=tb, n=N_pad, d=D)

    def _spec(shape, imap):
        if buffering is None:
            return pl.BlockSpec(shape, imap)
        return pl.BlockSpec(shape, imap, pipeline_mode=pl.Buffered(buffering))

    out_flat = pl.pallas_call(
        kernel,
        out_shape=jax.ShapeDtypeStruct((B * N_pad, D), dtype),
        grid=grid,
        in_specs=[
            _spec((tb, N_pad, N_pad), lambda b: (b, 0, 0)),   # mask block
            _spec((tb, N_pad, D), lambda b: (b, 0, 0)),       # nodes block
            pl.BlockSpec((D, D), lambda b: (0, 0)),           # W.T  (resident)
            pl.BlockSpec((1, D), lambda b: (0, 0)),           # bias (resident)
        ],
        out_specs=pl.BlockSpec((tb * N_pad, D), lambda b: (b, 0)),
        compiler_params=pltpu.CompilerParams(
            dimension_semantics=("parallel",),        # v7x: split over 2 TCs
            vmem_limit_bytes=_vmem_limit_bytes(vmem_cap)),
    )(mask3, nodes_p, w_t32, bias2)

    out = out_flat.reshape(B, N_pad, D)                  # free HBM reshape
    if N_pad != N:
        out = out[:, :N, :]
    return out


@jax.jit
def mp_layer_basic(nodes, edges, mask, w_c, b_c):
    """mpnn_type='basic': relu(Linear_c(mask @ nodes) + nodes)."""
    del edges  # unused by Basic_Aggregator / Basic_Combiner
    return _mp_layer_fused(nodes, mask, w_c.T, b_c, apply_relu=True)


@jax.jit
def mp_layer_basic_learnable(nodes, edges, mask, w_a, b_a, w_c, b_c):
    """mpnn_type='basic_learnable': Linear_c(Linear_a(mask @ nodes)) + nodes.

    No nonlinearity between the two Linears, so fold them into one affine map:
        y = msg @ (W_a.T @ W_c.T) + (b_a @ W_c.T + b_c) + nodes
    One-time (D, D) fold at full precision in the wrapper.
    """
    del edges
    hi = jax.lax.Precision.HIGHEST
    w_fold = jnp.matmul(w_a.T, w_c.T, precision=hi)           # (in, out)
    b_fold = jnp.matmul(b_a[None, :], w_c.T, precision=hi)[0] + b_c
    return _mp_layer_fused(nodes, mask, w_fold, b_fold, apply_relu=False)


# --------------------------- pure-JAX references -----------------------------

def ref_basic(nodes, mask, w_c, b_c):
    B, N, D = nodes.shape
    msg = jnp.matmul(mask.reshape(B, N, N).astype(nodes.dtype), nodes)
    return jnp.maximum(msg @ w_c.T + b_c + nodes, 0.0)


def ref_basic_learnable(nodes, mask, w_a, b_a, w_c, b_c):
    B, N, D = nodes.shape
    msg = jnp.matmul(mask.reshape(B, N, N).astype(nodes.dtype), nodes)
    agg = msg @ w_a.T + b_a
    return agg @ w_c.T + b_c + nodes


# --------------------------------- main ---------------------------------------

if __name__ == "__main__":
    B, N, D, E = 2, 8, 32, 4   # batch, n_nodes, state_dim, nb_features_edge

    key = jax.random.PRNGKey(0)
    k_nodes, k_edges, k_mask, k_wa, k_ba, k_wc, k_bc = jax.random.split(key, 7)

    nodes = jax.random.normal(k_nodes, (B, N, D), dtype=jnp.float32)
    edges = jax.random.normal(k_edges, (B, N * N, E), dtype=jnp.float32)
    mask = jax.random.bernoulli(k_mask, 0.5, (B, N, N)).astype(jnp.float32)

    # nn.Linear-like uniform(-1/sqrt(D), 1/sqrt(D)) init
    bound = 1.0 / np.sqrt(D)
    w_a = jax.random.uniform(k_wa, (D, D), jnp.float32, -bound, bound)
    b_a = jax.random.uniform(k_ba, (D,), jnp.float32, -bound, bound)
    w_c = jax.random.uniform(k_wc, (D, D), jnp.float32, -bound, bound)
    b_c = jax.random.uniform(k_bc, (D,), jnp.float32, -bound, bound)

    # mpnn_type='basic'
    out_basic = jax.block_until_ready(mp_layer_basic(nodes, edges, mask, w_c, b_c))
    np.testing.assert_allclose(
        np.asarray(out_basic), np.asarray(ref_basic(nodes, mask, w_c, b_c)),
        rtol=1e-5, atol=1e-5)

    # mpnn_type='basic_learnable'  (kernel uses the folded affine map; compare
    # against the unfolded two-Linear reference — only reassociation-level
    # differences expected, so a slightly looser tolerance.)
    out_bl = jax.block_until_ready(
        mp_layer_basic_learnable(nodes, edges, mask, w_a, b_a, w_c, b_c))
    np.testing.assert_allclose(
        np.asarray(out_bl),
        np.asarray(ref_basic_learnable(nodes, mask, w_a, b_a, w_c, b_c)),
        rtol=5e-5, atol=5e-5)

    print("KERNEL_OK")
</pallas_src>

<mosaic_0001>
module attributes {stable_mosaic.version = 11 : i64} {
  func.func @_mp_fused_kernel(%arg0: i32, %arg1: memref<1x8x8xbf16, #tpu.memory_space<vmem>>, %arg2: memref<1x8x32xf32, #tpu.memory_space<vmem>>, %arg3: memref<32x32xf32, #tpu.memory_space<vmem>>, %arg4: memref<1x32xf32, #tpu.memory_space<vmem>>, %arg5: memref<8x32xf32, #tpu.memory_space<vmem>>) attributes {dimension_semantics = [#tpu.dimension_semantics<parallel>], iteration_bounds = array<i64: 2>, scalar_prefetch = 0 : i64, scratch_operands = 0 : i64, tpu.core_type = #tpu.core_type<tc>, window_params = [{transform_indices = @transform_0, window_bounds = array<i64: 1, 8, 8>}, {transform_indices = @transform_1, window_bounds = array<i64: 1, 8, 32>}, {pipeline_mode = #tpu.pipeline_mode<synchronous>, transform_indices = @transform_2, window_bounds = array<i64: 32, 32>}, {pipeline_mode = #tpu.pipeline_mode<synchronous>, transform_indices = @transform_3, window_bounds = array<i64: 1, 32>}, {transform_indices = @transform_4, window_bounds = array<i64: 8, 32>}]} {
    %c0 = arith.constant 0 : index
    %c0_0 = arith.constant 0 : index
    %c0_1 = arith.constant 0 : index
    %0 = vector.load %arg1[%c0, %c0_0, %c0_1] : memref<1x8x8xbf16, #tpu.memory_space<vmem>>, vector<1x8x8xbf16>
    %1 = arith.extf %0 : vector<1x8x8xbf16> to vector<1x8x8xf32>
    %c0_2 = arith.constant 0 : index
    %c0_3 = arith.constant 0 : index
    %c0_4 = arith.constant 0 : index
    %2 = vector.load %arg2[%c0_2, %c0_3, %c0_4] : memref<1x8x32xf32, #tpu.memory_space<vmem>>, vector<1x8x32xf32>
    %cst = arith.constant dense<0.000000e+00> : vector<1x8x32xf32>
    %3 = tpu.matmul %1, %2, %cst {dimension_numbers = #tpu.dot_dimension_numbers<[2], [1], [1], [2], [0, 0, 0, 1, 1, 2], [0], [0]>} : vector<1x8x8xf32>, vector<1x8x32xf32>, vector<1x8x32xf32> -> vector<1x8x32xf32>
    %4 = vector.shape_cast %3 : vector<1x8x32xf32> to vector<8x32xf32>
    %5 = vector.shape_cast %2 : vector<1x8x32xf32> to vector<8x32xf32>
    %c0_5 = arith.constant 0 : index
    %c0_6 = arith.constant 0 : index
    %6 = vector.load %arg3[%c0_5, %c0_6] : memref<32x32xf32, #tpu.memory_space<vmem>>, vector<32x32xf32>
    %cst_7 = arith.constant dense<0.000000e+00> : vector<8x32xf32>
    %7 = tpu.matmul %4, %6, %cst_7 {dimension_numbers = #tpu.dot_dimension_numbers<[1], [0], [0], [1], [0, 0, 1, 1], [], []>} : vector<8x32xf32>, vector<32x32xf32>, vector<8x32xf32> -> vector<8x32xf32>
    %c0_8 = arith.constant 0 : index
    %c0_9 = arith.constant 0 : index
    %8 = vector.load %arg4[%c0_8, %c0_9] : memref<1x32xf32, #tpu.memory_space<vmem>>, vector<1x32xf32>
    %9 = vector.broadcast %8 : vector<1x32xf32> to vector<8x32xf32>
    %10 = arith.addf %7, %9 : vector<8x32xf32>
    %11 = arith.addf %10, %5 : vector<8x32xf32>
    %cst_10 = arith.constant 0.000000e+00 : f32
    %12 = vector.broadcast %cst_10 : f32 to vector<8x32xf32>
    %13 = arith.maximumf %11, %12 : vector<8x32xf32>
    %c0_11 = arith.constant 0 : index
    %c0_12 = arith.constant 0 : index
    %14 = vector.load %arg5[%c0_11, %c0_12] : memref<8x32xf32, #tpu.memory_space<vmem>>, vector<8x32xf32>
    tpu.vector_store %arg5[%c0_11, %c0_12], %13 {strides = array<i32>} : memref<8x32xf32, #tpu.memory_space<vmem>>, vector<8x32xf32>,
    return
  }
  func.func @transform_0(%arg0: i32) -> (i32, i32, i32) {
    %c0_i32 = arith.constant 0 : i32
    %c0_i32_0 = arith.constant 0 : i32
    %c0_i32_1 = arith.constant 0 : i32
    return %arg0, %c0_i32, %c0_i32_0 : i32, i32, i32
  }
  func.func @transform_1(%arg0: i32) -> (i32, i32, i32) {
    %c0_i32 = arith.constant 0 : i32
    %c0_i32_0 = arith.constant 0 : i32
    %c0_i32_1 = arith.constant 0 : i32
    return %arg0, %c0_i32, %c0_i32_0 : i32, i32, i32
  }
  func.func @transform_2(%arg0: i32) -> (i32, i32) {
    %c0_i32 = arith.constant 0 : i32
    %c0_i32_0 = arith.constant 0 : i32
    %c0_i32_1 = arith.constant 0 : i32
    return %c0_i32, %c0_i32_0 : i32, i32
  }
  func.func @transform_3(%arg0: i32) -> (i32, i32) {
    %c0_i32 = arith.constant 0 : i32
    %c0_i32_0 = arith.constant 0 : i32
    %c0_i32_1 = arith.constant 0 : i32
    return %c0_i32, %c0_i32_0 : i32, i32
  }
  func.func @transform_4(%arg0: i32) -> (i32, i32) {
    %c0_i32 = arith.constant 0 : i32
    %c0_i32_0 = arith.constant 0 : i32
    return %arg0, %c0_i32 : i32, i32
  }
}

</mosaic_0001>

<bundles_post_ra>
// kernel: mp_layer_basic.1
= control target key start
LH: loop header
LB: loop body
LE: loop exit
PB: predicated region body
PF: predicated region fallthrough
CT: control target
= control target key end

     0   :  { %9 = vsyncpa [#allocation3], 0  ;;  %s606_s0 = inlined_call_operand.vmem [shape: bf16[2,8,8], index: 0, kind: input, shape index: {}]   ;;  %s607_s1 = inlined_call_operand.vmem [shape: f32[2,8,32], index: 1, kind: input, shape index: {}]   ;;  %s608_s2 = inlined_call_operand.vmem [shape: f32[32,32], index: 2, kind: input, shape index: {}]   ;;  %s609_s3 = inlined_call_operand.vmem [shape: f32[1,32], index: 3, kind: input, shape index: {}]   ;;  %s610_s4 = inlined_call_operand.hbm [shape: f32[16,32], index: 4, kind: output, shape index: {}]  }
   0x1   :  { %11 = vsyncpa [#allocation3 + $0x1], 0  ;;  %s501_s15 = smov 0   ;;  %s503_s16 = smov 0  }
   0x2   :  { %s505_s17 = smov 0   ;;  %s507_s18 = smov 0  }
   0x3 LB: > { %s522_s19 = sadd.s32 4294967295, %s474_s18   ;;  %s359_s20 = sadd.s32 4294967294, %s474_s18   ;;  %s474_s18 = sphi %s507_s18, %s616_s18   ;;  %s470_s17 = sphi %s505_s17, %s615_s17   ;;  %s466_s16 = sphi %s503_s16, %s614_s16   ;;  %s462_s15 = sphi %s501_s15, %s613_s15  }
   0x4   : > { %s526_s21 = sadd.s32 1, %s474_s18   ;;  %s118_s22 = sadd.s32 1, %s470_s17 }
   0x5   : > { %s115_s23 = ssub.s32 %s474_s18, %s526_s21  ;;  %p128_p0 = scmp.ne.s32.totalorder %s470_s17, %s466_s16 }
   0x6   : > { %p116_p1 = scmp.eq.s32.totalorder %s115_s23, 0  ;;  %p129_p2 = scmp.eq.s32.totalorder %s522_s19, 1 }
   0x7   : > { %p134_p3 = scmp.ne.s32.totalorder %s466_s16, %s462_s15  ;;  %p135_p4 = scmp.eq.s32.totalorder %s359_s20, 1 }
   0x8   : > { %s537_s24 = scalar_select %p116_p1, %s470_s17, %s118_s22  }
   0x9   : > { %p539_p5 = por %p129_p2, %p128_p0  ;;  %p543_p6 = por %p135_p4, %p134_p3 }
   0xa   : > { %p362_p7 = scmp.ge.s32.totalorder %s474_s18, 1  ;;  %p173_p8 = scmp.lt.s32.totalorder %s474_s18, 3 }
   0xc   : > { %p174_p9 = pnand %p362_p7, %p173_p8 }
   0xd   : > { %p202_p10 = scmp.lt.s32.totalorder (!%p174_p9), %s522_s19, 1  ;;  %s199_s27 = sand.u32 (!%p174_p9), 1, %s466_s16  }
   0xe   : > { %177 = sbr.rel (%p174_p9) target bundleno = 288 (0x120), region = 36  ;;  %s363_s28 = sshll.u32 (!%p174_p9), %s199_s27, 3 }
   0xf   : > { %s369_s29 = sshll.u32 (!%p174_p9), %s522_s19, 3  ;;  %s432_s22 = scalar_lea.hbm (!%p174_p9), %s610_s4, 16 }
  0x13   : > { %v240_v0 = vld [vmem:[%s608_s2 + $0x18] sm:$0xff]  ;;  %v239_v1 = vld [vmem:[%s608_s2 + $0x10] sm:$0xff]  ;;  %s203_s5 = scalar_select %p202_p10, %s522_s19, 1  ;;  %v238_v2 = vld [vmem:[%s608_s2 + $0x8] sm:$0xff]  ;;  %vm213_vm0 = vcmask 64512   ;;  %vm245_vm1 = vcmask 261120  }
  0x14   : > { %261 = vmatpush.msra.mxu1 %v240_v0  ;;  %v237_v6 = vld [vmem:[%s608_s2] sm:$0xff]  ;;  %s273_s19 = scalar_lea.sflag [#allocation3], %s199_s27 }
  0x15   : > { %s365_s8 = sshll.u32 %s203_s5, 3  ;;  %s364_s9 = sshll.u32 %s203_s5, 2  ;;  %v411_v8 = vld [vmem:[%s609_s3] ss:$0 sm:$0xff] }
  0x16   : > { %262 = vmatpush.msra.mxu1 %v239_v1  ;;  %s209_s12 = scalar_lea.vmem %s607_s1, %s365_s8  ;;  %s205_s20 = scalar_lea.vmem %s606_s0, %s364_s9 }
  0x17   : > { %v212_v3 = vld [vmem:[%s209_s12] sm:$0xff]  ;;  %s283_s8 = scalar_lea.hbm %s610_s4, %s369_s29  ;;  %s201_s9 = scalar_lea.vmem [#allocation2], %s363_s28 }
  0x18   : > { %263 = vmatpush.msra.mxu1 %v238_v2  ;;  %v210_v4 = vld [vmem:[%s205_s20] sm:$0xf]  ;;  %232 = vmatpush.msra.mxu0 %v212_v3  ;;  %s285_s10 = sshll.u32 %s201_s9, 4  ;;  %s287_s11 = sshll.u32 %s283_s8, 4  ;;  %s286_s10 = int_to_ptr.vmem [resolvable:$true] %s285_s10  ;;  %s288_s11 = int_to_ptr.hbm [resolvable:$true] %s287_s11 }
  0x19   : > { %v211_v5 = vunpack.c.l.bf16 %v210_v4  ;;  %s426_s12 = sshra.s32 %s288_s11, 4  ;;  %s427_s12 = int_to_ptr.hbm [resolvable:$true] %s426_s12 }
  0x1a   : > { %264 = vmatpush.msra.mxu1 %v237_v6  ;;  %s428_s13 = scalar_lea.hbm %s427_s12, 8  ;;  %p433_p0 = scmp.lt.s32.totalorder %s427_s12, %s610_s4 }
  0x1b   : > { %366 = vmatmul.msk.f32.vlgmr.msra.gmra.mxu0 %vm213_vm0, %v211_v5  ;;  %p429_p11 = scmp.ne.s32.totalorder %s427_s12, %s428_s13  ;;  %p434_p1 = scmp.lt.s32.totalorder %s432_s22, %s428_s13 }
  0x1d   : > { %p430_p12 = pnand %p429_p11, %p539_p5  ;;  %p435_p2 = por %p434_p1, %p433_p0 }
  0x1f   : > { %p431_p13 = pneg %p430_p12 }
  0x21   : > { %p436_p3 = pnand %p435_p2, %p431_p13 }
  0x98   : > { %v234_v7 = vpop.f32.mrf.mxu0 }
  0x99   : > { %367 = vmatmul.msk.f32.vlgmr.msra.gmra.mxu1 %vm245_vm1, %v234_v7 }
 0x116   : > { %v266_v9 = vpop.f32.mrf.mxu1 }
 0x117   : > { %v267_v10 = vadd.f32 %v411_v8, %v266_v9 }
 0x119   : > { %v269_v11 = vadd.f32 %v267_v10, %v212_v3 }
 0x11b   : > { %v270_v12 = vmax.f32 %v269_v11, 0.0 }
 0x11d   : > { %271 = vst.msk [vmem:[%s201_s9] sm:$0xff] %vm245_vm1, %v270_v12 }
 0x11e   : > { %439 = shalt.err (!%p436_p3)
}
 0x11f   : > { %372 = dma.vmem_to_hbm [thread:$0]  (%p539_p5), %s286_s10, 128, %s288_s11, %s273_s19  }
 0x120 PF: > { %p378_p4 = scmp.ge.s32.totalorder %s474_s18, 2  ;;  %s299_s27 = sand.u32 1, %s462_s15  }
 0x121   : > { %s300_s29 = scalar_lea.sflag [#allocation3], %s299_s27 }
 0x122   : > { %p375_p7 = pnand %p378_p4, %p543_p6 }
 0x124   : > { %p376_p8 = pneg %p375_p7 }
 0x126   : > { %457 = dma.done.wait (%p376_p8), %s300_s29, 128  }
 0x127   : > { %459 = vsyncadd (%p376_p8), %s300_s29, 4294967168  ;;  %p14_p9 = scmp.ge.s32.totalorder %s526_s21, 4   ;;  %s613_s15 = smov %s466_s16 }
 0x128   : > { %s614_s16 = smov %s470_s17  ;;  %s615_s17 = smov %s537_s24 }
 0x129   : > { %s616_s18 = smov %s526_s21  ;;  %16 = sbr.rel (!%p14_p9) target bundleno = 3 (0x3), region = 74 }
 0x12e   :  { %306 = vsyncpa [#allocation3], 1 }
 0x12f   :  { %308 = vsyncpa [#allocation3 + $0x1], 1 }

</bundles_post_ra>
